<compile_context>
chip_gen: v5e
topology: v5e:2x2
jax: 0.10.0
libtpu: 0.0.40
codegen_flags: <defaults>
</compile_context>

<pallas_src>
import functools

import jax
import jax.numpy as jnp
from jax.experimental import pallas as pl
from jax.experimental.pallas import tpu as pltpu

_LANE = 128     # lane width: last dim of every tile is a multiple of this
_SUBLANE = 8    # f32 sublane width: second-to-last dim multiple


def _round_up(x, m):
    return ((x + m - 1) // m) * m


def _cdiv(a, b):
    return -(-a // b)


def _pad2d(a, rows, cols):
    pr, pc = rows - a.shape[0], cols - a.shape[1]
    if pr or pc:
        a = jnp.pad(a, ((0, pr), (0, pc)))
    return a


def _usable_vmem_bytes():
    """Per-core VMEM we allow ourselves: generation-aware capacity minus
    headroom for compiler-internal scratch.  Conservative (v7x-sized) fallback
    if the query is unavailable."""
    try:
        cap = int(pltpu.get_tpu_info().vmem_capacity_bytes)
    except Exception:
        cap = 64 << 20                      # v7x physical per-TC VMEM
    return max(16 << 20, cap - (12 << 20))  # leave ~12 MiB headroom


# -----------------------------------------------------------------------------
# One-time parameter preprocessing (do at load time, NOT per forward call)
# -----------------------------------------------------------------------------
def prepare_params(weights, biases):
    """weights[i]: (in_i, out_i) f32;  biases[i]: (out_i,) f32.
    Returns padded bf16 weights and padded f32 (1, out_p) biases."""
    w_p, b_p, dims = [], [], []
    for w, b in zip(weights, biases):
        in_p = _round_up(int(w.shape[0]), _LANE)
        out_p = _round_up(int(w.shape[1]), _LANE)
        w_p.append(_pad2d(jnp.asarray(w, jnp.float32), in_p, out_p)
                   .astype(jnp.bfloat16))
        b_p.append(_pad2d(jnp.asarray(b, jnp.float32).reshape(1, -1), 1, out_p))
        dims.append((int(w.shape[0]), int(w.shape[1])))
    return {"weights": w_p, "biases": b_p, "dims": tuple(dims)}


# -----------------------------------------------------------------------------
# Fused path: all weights VMEM-resident, grid over row tiles only
# -----------------------------------------------------------------------------
def _fused_kernel(n_layers, x_ref, *refs):
    """refs = (w0, b0, ..., wL, bL, out_ref).  Weights bf16, biases f32."""
    out_ref = refs[-1]
    wb = refs[:-1]

    x = x_ref[...]                              # (tm, d_pad) f32 residual source
    h = x.astype(jnp.bfloat16)                  # single cast feeds layer 0
    for layer in range(n_layers + 1):
        w = wb[2 * layer][...]                  # (in_p, out_p) bf16
        b = wb[2 * layer + 1][...]              # (1, out_p)  f32
        acc = jnp.dot(h, w, preferred_element_type=jnp.float32) + b
        if layer < n_layers:                    # ReLU on all but the last layer
            h = jnp.maximum(acc, 0.0).astype(jnp.bfloat16)
        else:
            h = acc                             # f32
    out_ref[...] = (h + x).astype(out_ref.dtype)


def _choose_tm_fused(m_rows, d_pad, max_out_p, wb_bytes, usable_vmem):
    """VMEM-aware row tile: per-row cost covers double-buffered f32 in/out
    tiles plus the f32 intermediate activation and its bf16 cast."""
    per_row = d_pad * 4 * 2 + d_pad * 4 * 2 + max_out_p * (4 + 2)
    avail = usable_vmem - wb_bytes - (4 << 20)          # compiler-scratch slack
    tm_max = max(_SUBLANE, (avail // per_row) // _SUBLANE * _SUBLANE)
    tm = int(min(tm_max, 1024, _round_up(m_rows, _SUBLANE)))
    # Prefer >= 2 grid steps for megacore (v7x) once tiles stay reasonably big;
    # tiny M keeps a single step (no benefit from splitting on v5e/v6e).
    if m_rows >= 512 and _cdiv(m_rows, tm) < 2:
        tm = _round_up(_cdiv(m_rows, 2), _SUBLANE)
    return max(_SUBLANE, tm)


def _residual_mlp_fused(x_p, w_p, b_p, usable_vmem, out_dtype):
    M, d_pad = int(x_p.shape[0]), int(x_p.shape[1])
    n_layers = len(w_p) - 1

    w_bytes = sum(int(w.size) * 2 for w in w_p)
    b_bytes = sum(int(b.size) * 4 for b in b_p)
    max_out_p = max(int(w.shape[1]) for w in w_p)

    tm = _choose_tm_fused(M, d_pad, max_out_p, w_bytes + b_bytes, usable_vmem)
    grid = (_cdiv(M, tm),)
    m_eff = grid[0] * tm

    # VMEM budget: resident weights/biases + double-buffered in/out tiles +
    # intermediate activation (f32 + bf16 cast) + headroom.
    act_bytes = 2 * tm * d_pad * 4 + 2 * tm * d_pad * 4 + tm * max_out_p * (4 + 2)
    vmem_needed = w_bytes + b_bytes + act_bytes + (4 << 20)
    vmem_limit = int(min(max(vmem_needed, 16 << 20), usable_vmem))

    # Cost estimate over padded dims (real MXU work).
    flops = 2 * m_eff * sum(int(w.shape[0]) * int(w.shape[1]) for w in w_p)
    bytes_accessed = 2 * M * d_pad * 4 + w_bytes + b_bytes

    wb_spec = pl.BlockSpec(memory_space=pltpu.MemorySpace.VMEM)  # whole array, 1 copy
    in_specs = [pl.BlockSpec((tm, d_pad), lambda i: (i, 0))]
    operands = [x_p]
    for w, b in zip(w_p, b_p):
        in_specs += [wb_spec, wb_spec]
        operands += [w, b]
    out_spec = pl.BlockSpec((tm, d_pad), lambda i: (i, 0))

    return pl.pallas_call(
        functools.partial(_fused_kernel, n_layers),
        out_shape=jax.ShapeDtypeStruct((M, d_pad), out_dtype),
        grid_spec=pltpu.PrefetchScalarGridSpec(
            num_scalar_prefetch=0,
            grid=grid,
            in_specs=in_specs,
            out_specs=out_spec,
        ),
        compiler_params=pltpu.CompilerParams(
            dimension_semantics=("parallel",),
            vmem_limit_bytes=vmem_limit,
        ),
        cost_estimate=pl.CostEstimate(
            flops=int(flops), transcendentals=0,
            bytes_accessed=int(bytes_accessed)),
    )(*operands)


# -----------------------------------------------------------------------------
# Per-layer path: for weight sets too large to keep VMEM-resident (v7x 64 MiB)
# -----------------------------------------------------------------------------
def _layer_kernel(apply_relu, add_residual, *refs):
    if add_residual:
        x_ref, w_ref, b_ref, r_ref, o_ref, acc_ref = refs
    else:
        x_ref, w_ref, b_ref, o_ref, acc_ref = refs

    k = pl.program_id(2)

    @pl.when(k == 0)
    def _():
        acc_ref[...] = jnp.zeros_like(acc_ref)

    acc_ref[...] += jnp.dot(x_ref[...].astype(jnp.bfloat16), w_ref[...],
                            preferred_element_type=jnp.float32)

    @pl.when(k == pl.num_programs(2) - 1)
    def _():
        h = acc_ref[...] + b_ref[...]
        if apply_relu:
            h = jnp.maximum(h, 0.0)
        if add_residual:
            h = h + r_ref[...]
        o_ref[...] = h.astype(o_ref.dtype)


def _largest_divisor_tile(dim, cap):
    """Largest multiple of 128 that divides `dim` and is <= cap (dim % 128 == 0)."""
    t = (min(dim, cap) // _LANE) * _LANE
    while t > _LANE and dim % t:
        t -= _LANE
    return max(_LANE, t)


def _residual_mlp_layered(x_p, w_p, b_p, usable_vmem, out_dtype):
    n_layers = len(w_p) - 1
    h = x_p
    for layer in range(n_layers + 1):
        w, b = w_p[layer], b_p[layer]
        k_pad, n_pad = int(w.shape[0]), int(w.shape[1])
        M = int(h.shape[0])
        last = layer == n_layers

        tk = _largest_divisor_tile(k_pad, 512)   # K tiles must divide k_pad
        tn = _largest_divisor_tile(n_pad, 512)
        tm = min(256, _round_up(M, _SUBLANE))
        grid = (_cdiv(M, tm), n_pad // tn, k_pad // tk)

        in_specs = [
            pl.BlockSpec((tm, tk), lambda i, j, k: (i, k)),
            pl.BlockSpec((tk, tn), lambda i, j, k: (k, j)),
            pl.BlockSpec((1, tn), lambda i, j, k: (0, j)),
        ]
        operands = [h, w, b]
        if last:
            in_specs.append(pl.BlockSpec((tm, tn), lambda i, j, k: (i, j)))
            operands.append(x_p)                 # residual source
        out_spec = pl.BlockSpec((tm, tn), lambda i, j, k: (i, j))

        tile_bytes = (2 * tm * tk * 4 + 2 * tk * tn * 2 + 2 * tn * 4
                      + 2 * tm * tn * 4 + tm * tn * 4)
        if last:
            tile_bytes += 2 * tm * tn * 4
        vmem_limit = int(min(max(2 * tile_bytes + (4 << 20), 16 << 20),
                             usable_vmem))

        flops = 2 * grid[0] * tm * n_pad * k_pad
        bytes_accessed = (M * k_pad * 4 + k_pad * n_pad * 2 + n_pad * 4
                          + M * n_pad * 4 + (M * n_pad * 4 if last else 0))

        h = pl.pallas_call(
            functools.partial(_layer_kernel, not last, last),
            out_shape=jax.ShapeDtypeStruct(
                (M, n_pad), out_dtype if last else jnp.float32),
            grid_spec=pltpu.PrefetchScalarGridSpec(
                num_scalar_prefetch=0,
                grid=grid,
                in_specs=in_specs,
                out_specs=out_spec,
                scratch_shapes=[pltpu.VMEM((tm, tn), jnp.float32)],
            ),
            compiler_params=pltpu.CompilerParams(
                dimension_semantics=("parallel", "parallel", "arbitrary"),
                vmem_limit_bytes=vmem_limit,
            ),
            cost_estimate=pl.CostEstimate(
                flops=int(flops), transcendentals=0,
                bytes_accessed=int(bytes_accessed)),
        )(*operands)
    return h


# -----------------------------------------------------------------------------
# Public forward
# -----------------------------------------------------------------------------
def residual_mlp_pallas(x2d, params):
    """x2d: (M, D_in).  params: output of prepare_params() (pre-padded bf16
    weights / f32 biases) — no weight preprocessing happens per call."""
    w_p, b_p = params["weights"], params["biases"]
    M, D_in = int(x2d.shape[0]), int(x2d.shape[1])
    d_pad = int(w_p[0].shape[0])                 # round_up(D_in, 128)
    assert params["dims"][0][0] == D_in, "params do not match input feature dim"

    usable_vmem = _usable_vmem_bytes()

    # Feature (lane/K) zero-pad only when required for correctness; rows are
    # never padded (ragged last M tile handled by grid = cdiv(M, tm)).
    if d_pad != D_in:
        x_p = _pad2d(x2d.astype(jnp.float32), M, d_pad)
    else:
        x_p = x2d.astype(jnp.float32)

    w_bytes = sum(int(w.size) * 2 for w in w_p)
    b_bytes = sum(int(b.size) * 4 for b in b_p)
    fused_ok = (w_bytes + b_bytes) <= int(0.6 * usable_vmem)

    if fused_ok:
        out = _residual_mlp_fused(x_p, w_p, b_p, usable_vmem, x2d.dtype)
    else:
        out = _residual_mlp_layered(x_p, w_p, b_p, usable_vmem, x2d.dtype)

    if d_pad != D_in:
        out = out[:, :D_in]
    return out


# -----------------------------------------------------------------------------
# Parameter construction + plain-JAX reference (mirrors the PyTorch module)
# -----------------------------------------------------------------------------
def make_params(key, input_dim, hidden_dim, num_layers):
    """Xavier-normal weights (stored as (in, out) for x @ W), zero biases.
    Mirrors make_linear_transform(): xavier_normal_(weight), zeros_(bias)."""
    weights, biases = [], []
    for layer in range(num_layers + 1):
        in_size = input_dim if layer == 0 else hidden_dim
        out_size = input_dim if layer == num_layers else hidden_dim
        key, sub = jax.random.split(key)
        std = (2.0 / (in_size + out_size)) ** 0.5     # xavier_normal, gain=1
        w_torch_layout = jax.random.normal(sub, (out_size, in_size), jnp.float32) * std
        weights.append(jnp.transpose(w_torch_layout))  # (in, out)
        biases.append(jnp.zeros((out_size,), jnp.float32))
    return weights, biases


def residual_mlp_reference(x2d, weights, biases):
    n_layers = len(weights) - 1
    h = x2d
    for layer in range(n_layers + 1):
        h = h @ weights[layer] + biases[layer]
        if layer < n_layers:
            h = jnp.maximum(h, 0.0)
    return h + x2d


if __name__ == "__main__":
    # Small shapes consistent with the module: batch=2, seq=8, input_dim=32,
    # hidden_dim=64, num_layers=2 nonlinear layers + final projection.
    batch, seq, input_dim = 2, 8, 32
    hidden_dim, num_layers = 64, 2

    key = jax.random.PRNGKey(0)
    key, kx = jax.random.split(key)
    x = jax.random.normal(kx, (batch, seq, input_dim), jnp.float32)
    weights, biases = make_params(key, input_dim, hidden_dim, num_layers)

    params = prepare_params(weights, biases)      # one-time, at parameter load
    x2d = x.reshape(batch * seq, input_dim)       # flatten leading dims
    out2d = residual_mlp_pallas(x2d, params)
    out = out2d.reshape(batch, seq, input_dim)
    jax.block_until_ready(out)

    # Correctness vs. f32 reference (MXU path is bf16 x bf16 -> f32 accumulate,
    # so allow bf16-level tolerance).
    ref = residual_mlp_reference(x2d, weights, biases).reshape(x.shape)
    assert jnp.allclose(out, ref, atol=5e-2, rtol=5e-2), "mismatch vs reference"

    print("KERNEL_OK")
</pallas_src>

<mosaic_0001>
module attributes {stable_mosaic.version = 11 : i64} {
  func.func @_fused_kernel(%arg0: i32, %arg1: memref<16x128xf32, #tpu.memory_space<vmem>>, %arg2: memref<128x128xbf16, #tpu.memory_space<vmem>>, %arg3: memref<1x128xf32, #tpu.memory_space<vmem>>, %arg4: memref<128x128xbf16, #tpu.memory_space<vmem>>, %arg5: memref<1x128xf32, #tpu.memory_space<vmem>>, %arg6: memref<128x128xbf16, #tpu.memory_space<vmem>>, %arg7: memref<1x128xf32, #tpu.memory_space<vmem>>, %arg8: memref<16x128xf32, #tpu.memory_space<vmem>>) attributes {dimension_semantics = [#tpu.dimension_semantics<parallel>], iteration_bounds = array<i64: 1>, scalar_prefetch = 0 : i64, scratch_operands = 0 : i64, tpu.core_type = #tpu.core_type<tc>, window_params = [{transform_indices = @transform_0, window_bounds = array<i64: 16, 128>}, {pipeline_mode = #tpu.pipeline_mode<synchronous>, transform_indices = @transform_1, window_bounds = array<i64: 128, 128>}, {pipeline_mode = #tpu.pipeline_mode<synchronous>, transform_indices = @transform_2, window_bounds = array<i64: 1, 128>}, {pipeline_mode = #tpu.pipeline_mode<synchronous>, transform_indices = @transform_3, window_bounds = array<i64: 128, 128>}, {pipeline_mode = #tpu.pipeline_mode<synchronous>, transform_indices = @transform_4, window_bounds = array<i64: 1, 128>}, {pipeline_mode = #tpu.pipeline_mode<synchronous>, transform_indices = @transform_5, window_bounds = array<i64: 128, 128>}, {pipeline_mode = #tpu.pipeline_mode<synchronous>, transform_indices = @transform_6, window_bounds = array<i64: 1, 128>}, {transform_indices = @transform_7, window_bounds = array<i64: 16, 128>}]} {
    %c0 = arith.constant 0 : index
    %c0_0 = arith.constant 0 : index
    %0 = vector.load %arg1[%c0, %c0_0] : memref<16x128xf32, #tpu.memory_space<vmem>>, vector<16x128xf32>
    %1 = arith.truncf %0 : vector<16x128xf32> to vector<16x128xbf16>
    %c0_1 = arith.constant 0 : index
    %c0_2 = arith.constant 0 : index
    %2 = vector.load %arg2[%c0_1, %c0_2] : memref<128x128xbf16, #tpu.memory_space<vmem>>, vector<128x128xbf16>
    %c0_3 = arith.constant 0 : index
    %c0_4 = arith.constant 0 : index
    %3 = vector.load %arg3[%c0_3, %c0_4] : memref<1x128xf32, #tpu.memory_space<vmem>>, vector<1x128xf32>
    %cst = arith.constant dense<0.000000e+00> : vector<16x128xf32>
    %4 = tpu.matmul %1, %2, %cst {dimension_numbers = #tpu.dot_dimension_numbers<[1], [0], [0], [1], [0, 0, 1, 1], [], []>} : vector<16x128xbf16>, vector<128x128xbf16>, vector<16x128xf32> -> vector<16x128xf32>
    %5 = vector.broadcast %3 : vector<1x128xf32> to vector<16x128xf32>
    %6 = arith.addf %4, %5 : vector<16x128xf32>
    %cst_5 = arith.constant 0.000000e+00 : f32
    %7 = vector.broadcast %cst_5 : f32 to vector<16x128xf32>
    %8 = arith.maximumf %6, %7 : vector<16x128xf32>
    %9 = arith.truncf %8 : vector<16x128xf32> to vector<16x128xbf16>
    %c0_6 = arith.constant 0 : index
    %c0_7 = arith.constant 0 : index
    %10 = vector.load %arg4[%c0_6, %c0_7] : memref<128x128xbf16, #tpu.memory_space<vmem>>, vector<128x128xbf16>
    %c0_8 = arith.constant 0 : index
    %c0_9 = arith.constant 0 : index
    %11 = vector.load %arg5[%c0_8, %c0_9] : memref<1x128xf32, #tpu.memory_space<vmem>>, vector<1x128xf32>
    %cst_10 = arith.constant dense<0.000000e+00> : vector<16x128xf32>
    %12 = tpu.matmul %9, %10, %cst_10 {dimension_numbers = #tpu.dot_dimension_numbers<[1], [0], [0], [1], [0, 0, 1, 1], [], []>} : vector<16x128xbf16>, vector<128x128xbf16>, vector<16x128xf32> -> vector<16x128xf32>
    %13 = vector.broadcast %11 : vector<1x128xf32> to vector<16x128xf32>
    %14 = arith.addf %12, %13 : vector<16x128xf32>
    %cst_11 = arith.constant 0.000000e+00 : f32
    %15 = vector.broadcast %cst_11 : f32 to vector<16x128xf32>
    %16 = arith.maximumf %14, %15 : vector<16x128xf32>
    %17 = arith.truncf %16 : vector<16x128xf32> to vector<16x128xbf16>
    %c0_12 = arith.constant 0 : index
    %c0_13 = arith.constant 0 : index
    %18 = vector.load %arg6[%c0_12, %c0_13] : memref<128x128xbf16, #tpu.memory_space<vmem>>, vector<128x128xbf16>
    %c0_14 = arith.constant 0 : index
    %c0_15 = arith.constant 0 : index
    %19 = vector.load %arg7[%c0_14, %c0_15] : memref<1x128xf32, #tpu.memory_space<vmem>>, vector<1x128xf32>
    %cst_16 = arith.constant dense<0.000000e+00> : vector<16x128xf32>
    %20 = tpu.matmul %17, %18, %cst_16 {dimension_numbers = #tpu.dot_dimension_numbers<[1], [0], [0], [1], [0, 0, 1, 1], [], []>} : vector<16x128xbf16>, vector<128x128xbf16>, vector<16x128xf32> -> vector<16x128xf32>
    %21 = vector.broadcast %19 : vector<1x128xf32> to vector<16x128xf32>
    %22 = arith.addf %20, %21 : vector<16x128xf32>
    %23 = arith.addf %22, %0 : vector<16x128xf32>
    %c0_17 = arith.constant 0 : index
    %c0_18 = arith.constant 0 : index
    %24 = vector.load %arg8[%c0_17, %c0_18] : memref<16x128xf32, #tpu.memory_space<vmem>>, vector<16x128xf32>
    tpu.vector_store %arg8[%c0_17, %c0_18], %23 {strides = array<i32>} : memref<16x128xf32, #tpu.memory_space<vmem>>, vector<16x128xf32>,
    return
  }
  func.func @transform_0(%arg0: i32) -> (i32, i32) {
    %c0_i32 = arith.constant 0 : i32
    %c0_i32_0 = arith.constant 0 : i32
    return %arg0, %c0_i32 : i32, i32
  }
  func.func @transform_1(%arg0: i32) -> (i32, i32) {
    %c0_i32 = arith.constant 0 : i32
    %c0_i32_0 = arith.constant 0 : i32
    %c0_i32_1 = arith.constant 0 : i32
    return %c0_i32, %c0_i32_0 : i32, i32
  }
  func.func @transform_2(%arg0: i32) -> (i32, i32) {
    %c0_i32 = arith.constant 0 : i32
    %c0_i32_0 = arith.constant 0 : i32
    %c0_i32_1 = arith.constant 0 : i32
    return %c0_i32, %c0_i32_0 : i32, i32
  }
  func.func @transform_3(%arg0: i32) -> (i32, i32) {
    %c0_i32 = arith.constant 0 : i32
    %c0_i32_0 = arith.constant 0 : i32
    %c0_i32_1 = arith.constant 0 : i32
    return %c0_i32, %c0_i32_0 : i32, i32
  }
  func.func @transform_4(%arg0: i32) -> (i32, i32) {
    %c0_i32 = arith.constant 0 : i32
    %c0_i32_0 = arith.constant 0 : i32
    %c0_i32_1 = arith.constant 0 : i32
    return %c0_i32, %c0_i32_0 : i32, i32
  }
  func.func @transform_5(%arg0: i32) -> (i32, i32) {
    %c0_i32 = arith.constant 0 : i32
    %c0_i32_0 = arith.constant 0 : i32
    %c0_i32_1 = arith.constant 0 : i32
    return %c0_i32, %c0_i32_0 : i32, i32
  }
  func.func @transform_6(%arg0: i32) -> (i32, i32) {
    %c0_i32 = arith.constant 0 : i32
    %c0_i32_0 = arith.constant 0 : i32
    %c0_i32_1 = arith.constant 0 : i32
    return %c0_i32, %c0_i32_0 : i32, i32
  }
  func.func @transform_7(%arg0: i32) -> (i32, i32) {
    %c0_i32 = arith.constant 0 : i32
    %c0_i32_0 = arith.constant 0 : i32
    return %arg0, %c0_i32 : i32, i32
  }
}

</mosaic_0001>

<bundles_post_ra>
// kernel: tpu_custom_call.1
= control target key start
LH: loop header
LB: loop body
LE: loop exit
PB: predicated region body
PF: predicated region fallthrough
CT: control target
= control target key end

     0   :  { %12 = vsyncpa [#allocation3], 0  ;;  %s709_s0 = inlined_call_operand.hbm [shape: f32[16,128], index: 0, kind: input, shape index: {}]   ;;  %s710_s1 = inlined_call_operand.hbm [shape: bf16[128,128], index: 1, kind: input, shape index: {}]   ;;  %s711_s2 = inlined_call_operand.vmem [shape: f32[1,128], index: 2, kind: input, shape index: {}]   ;;  %s712_s3 = inlined_call_operand.hbm [shape: bf16[128,128], index: 3, kind: input, shape index: {}]   ;;  %s713_s4 = inlined_call_operand.vmem [shape: f32[1,128], index: 4, kind: input, shape index: {}]   ;;  %s714_s5 = inlined_call_operand.hbm [shape: bf16[128,128], index: 5, kind: input, shape index: {}]   ;;  %s715_s6 = inlined_call_operand.vmem [shape: f32[1,128], index: 6, kind: input, shape index: {}]   ;;  %s716_s7 = inlined_call_operand.hbm [shape: f32[16,128], index: 7, kind: output, shape index: {}]  }
   0x1   :  { %13 = vsyncpa [#allocation6], 0 }
   0x2   :  { %14 = vsyncpa [#allocation9], 0  ;;  %s33_s26 = sshll.u32 %s710_s1, 4  ;;  %s34_s26 = int_to_ptr.hbm [resolvable:$true] %s33_s26 }
   0x3   :  { %15 = vsyncpa [#allocation4], 0  ;;  %s630_s27 = smov [#allocation5]   ;;  %s20_s8 = sshll.u32 %s709_s0, 4  ;;  %s21_s8 = int_to_ptr.hbm [resolvable:$true] %s20_s8 }
   0x4   :  { %s35_s28 = sshll.u32 %s630_s27, 4  ;;  %s631_s9 = smov 64   ;;  %s36_s28 = int_to_ptr.vmem [resolvable:$true] %s35_s28 }
   0x5   :  { %s632_s10 = smov 4   ;;  %s633_s11 = smov [#allocation2]  }
   0x6   :  { %41 = dma.hbm_to_vmem [thread:$0]  %s34_s26, 1024, %s36_s28, [#allocation6], %s631_s9, %s631_s9, %s632_s10  }
   0x7   :  { %s22_s12 = sshll.u32 %s633_s11, 4  ;;  %s634_s13 = smov 128   ;;  %s23_s12 = int_to_ptr.vmem [resolvable:$true] %s22_s12 }
   0x8   :  { %s635_s14 = smov 8   ;;  %s48_s16 = sshll.u32 %s712_s3, 4  ;;  %s49_s16 = int_to_ptr.hbm [resolvable:$true] %s48_s16 }
   0x9   :  { %28 = dma.hbm_to_vmem [thread:$0]  %s21_s8, 256, %s23_s12, [#allocation3], %s634_s13, %s634_s13, %s635_s14  }
   0xa   :  { %s636_s17 = smov [#allocation7]   ;;  %s63_s20 = sshll.u32 %s714_s5, 4  ;;  %s64_s20 = int_to_ptr.hbm [resolvable:$true] %s63_s20 }
   0xb   :  { %s50_s0 = sshll.u32 %s636_s17, 4  ;;  %s637_s21 = smov [#allocation8]   ;;  %s51_s0 = int_to_ptr.vmem [resolvable:$true] %s50_s0 }
   0xc   :  { %56 = dma.hbm_to_vmem [thread:$0]  %s49_s16, 1024, %s51_s0, [#allocation6], %s631_s9, %s631_s9, %s632_s10  }
   0xd   :  { %s65_s22 = sshll.u32 %s637_s21, 4  ;;  %s66_s22 = int_to_ptr.vmem [resolvable:$true] %s65_s22 }
   0xe   :  { %71 = dma.hbm_to_vmem [thread:$0]  %s64_s20, 1024, %s66_s22, [#allocation9], %s631_s9, %s631_s9, %s632_s10  }
   0xf   :  { %622 = dma.done.wait [#allocation3], 256  }
  0x10   :  { %623 = vsyncadd [#allocation3], 4294967040 }
  0x11   :  { %624 = dma.done.wait [#allocation6], 2048  }
  0x12   :  { %625 = vsyncadd [#allocation6], 4294965248 }
  0x13   :  { %626 = dma.done.wait [#allocation9], 1024  }
  0x14   :  { %627 = vsyncadd [#allocation9], 4294966272  ;;  %v473_v0 = vld [vmem:[#allocation5 + $0x38] sm:$0xff]  ;;  %v472_v1 = vld [vmem:[#allocation5 + $0x30] sm:$0xff]  ;;  %s638_s26 = smov [#allocation10]   ;;  %s355_s29 = sshll.u32 %s716_s7, 4  ;;  %s356_s29 = int_to_ptr.hbm [resolvable:$true] %s355_s29 }
  0x15   :  { %161 = vmatpush.bf16.msra.mxu0 %v473_v0  ;;  %v481_v2 = vld [vmem:[#allocation7 + $0x38] sm:$0xff]  ;;  %v480_v3 = vld [vmem:[#allocation7 + $0x30] sm:$0xff]  ;;  %v471_v4 = vld [vmem:[#allocation5 + $0x28] sm:$0xff]  ;;  %s353_s27 = sshll.u32 %s638_s26, 4  ;;  %s354_s27 = int_to_ptr.vmem [resolvable:$true] %s353_s27 }
  0x16   :  { %246 = vmatpush.bf16.msra.mxu1 %v481_v2  ;;  %v479_v5 = vld [vmem:[#allocation7 + $0x28] sm:$0xff]  ;;  %v470_v6 = vld [vmem:[#allocation5 + $0x20] sm:$0xff]  ;;  %v469_v8 = vld [vmem:[#allocation5 + $0x18] sm:$0xff] }
  0x17   :  { %v478_v7 = vld [vmem:[#allocation7 + $0x20] sm:$0xff]  ;;  %v468_v9 = vld [vmem:[#allocation5 + $0x10] sm:$0xff]  ;;  %v467_v10 = vld [vmem:[#allocation5 + $0x8] sm:$0xff] }
  0x18   :  { %v466_v11 = vld [vmem:[#allocation5] sm:$0xff]  ;;  %v90_v12 = vld [vmem:[#allocation2] sm:$0xff]  ;;  %v91_v13 = vld [vmem:[#allocation2 + $0x8] sm:$0xff] }
  0x19   :  { %162 = vmatpush.bf16.msra.mxu0 %v472_v1  ;;  %v92_v14 = vpack.c.bf16 %v91_v13, %v90_v12  ;;  %v477_v15 = vld [vmem:[#allocation7 + $0x18] sm:$0xff]  ;;  %v476_v16 = vld [vmem:[#allocation7 + $0x10] sm:$0xff]  ;;  %v475_v17 = vld [vmem:[#allocation7 + $0x8] sm:$0xff] }
  0x1a   :  { %247 = vmatpush.bf16.msra.mxu1 %v480_v3  ;;  %v474_v18 = vld [vmem:[#allocation7] sm:$0xff]  ;;  %v489_v19 = vld [vmem:[#allocation8 + $0x38] sm:$0xff]  ;;  %v488_v20 = vld [vmem:[#allocation8 + $0x30] sm:$0xff] }
  0x1b   :  { %331 = vmatpush.bf16.msra.mxu2 %v489_v19  ;;  %v487_v21 = vld [vmem:[#allocation8 + $0x28] sm:$0xff]  ;;  %v486_v22 = vld [vmem:[#allocation8 + $0x20] sm:$0xff]  ;;  %v499_v24 = vld [vmem:[%s711_s2] ss:$0 sm:$0xff] }
  0x1c   :  { %v485_v31 = vld [vmem:[#allocation8 + $0x18] sm:$0xff]  ;;  %v484_v32 = vld [vmem:[#allocation8 + $0x10] sm:$0xff]  ;;  %v483_v33 = vld [vmem:[#allocation8 + $0x8] sm:$0xff] }
  0x1d   :  { %163 = vmatpush.bf16.msra.mxu0 %v471_v4  ;;  %v482_v34 = vld [vmem:[#allocation8] sm:$0xff]  ;;  %v500_v36 = vld [vmem:[%s713_s4] ss:$0 sm:$0xff] }
  0x1e   :  { %248 = vmatpush.bf16.msra.mxu1 %v479_v5  ;;  %v501_v43 = vld [vmem:[%s715_s6] ss:$0 sm:$0xff] }
  0x1f   :  { %332 = vmatpush.bf16.msra.mxu2 %v488_v20 }
  0x21   :  { %164 = vmatpush.bf16.msra.mxu0 %v470_v6 }
  0x22   :  { %249 = vmatpush.bf16.msra.mxu1 %v478_v7 }
  0x23   :  { %333 = vmatpush.bf16.msra.mxu2 %v487_v21 }
  0x25   :  { %165 = vmatpush.bf16.msra.mxu0 %v469_v8 }
  0x26   :  { %250 = vmatpush.bf16.msra.mxu1 %v477_v15 }
  0x27   :  { %334 = vmatpush.bf16.msra.mxu2 %v486_v22 }
  0x29   :  { %166 = vmatpush.bf16.msra.mxu0 %v468_v9 }
  0x2a   :  { %251 = vmatpush.bf16.msra.mxu1 %v476_v16 }
  0x2b   :  { %335 = vmatpush.bf16.msra.mxu2 %v485_v31 }
  0x2d   :  { %167 = vmatpush.bf16.msra.mxu0 %v467_v10 }
  0x2e   :  { %252 = vmatpush.bf16.msra.mxu1 %v475_v17 }
  0x2f   :  { %336 = vmatpush.bf16.msra.mxu2 %v484_v32 }
  0x31   :  { %168 = vmatpush.bf16.msra.mxu0 %v466_v11 }
  0x32   :  { %253 = vmatpush.bf16.msra.mxu1 %v474_v18 }
  0x33   :  { %337 = vmatpush.bf16.msra.mxu2 %v483_v33 }
  0x34   :  { %169 = vmatmul.bf16.vlgmr.msra.gmra.mxu0 %v92_v14 }
  0x37   :  { %338 = vmatpush.bf16.msra.mxu2 %v482_v34 }
  0xb1   :  { %v170_v23 = vpop.f32.mrf.mxu0 }
  0xb2   :  { %v171_v25 = vadd.f32 %v499_v24, %v170_v23 }
  0xb4   :  { %v175_v28 = vmax.f32 %v171_v25, 0.0 }
  0xb9   :  { %v172_v26 = vpop.f32.mrf.mxu0 }
  0xba   :  { %v173_v27 = vadd.f32 %v499_v24, %v172_v26 }
  0xbc   :  { %v176_v29 = vmax.f32 %v173_v27, 0.0 }
  0xbe   :  { %v177_v30 = vpack.c.bf16 %v176_v29, %v175_v28 }
  0xc0   :  { %254 = vmatmul.bf16.vlgmr.msra.gmra.mxu1 %v177_v30 }
 0x13d   :  { %v255_v35 = vpop.f32.mrf.mxu1 }
 0x13e   :  { %v256_v37 = vadd.f32 %v500_v36, %v255_v35 }
 0x140   :  { %v260_v40 = vmax.f32 %v256_v37, 0.0 }
 0x145   :  { %v257_v38 = vpop.f32.mrf.mxu1 }
 0x146   :  { %v258_v39 = vadd.f32 %v500_v36, %v257_v38 }
 0x148   :  { %v261_v41 = vmax.f32 %v258_v39, 0.0 }
 0x14a   :  { %v262_v42 = vpack.c.bf16 %v261_v41, %v260_v40 }
 0x14c   :  { %339 = vmatmul.bf16.vlgmr.msra.gmra.mxu2 %v262_v42 }
 0x1cf   :  { %v340_v44 = vpop.f32.mrf.mxu2 }
 0x1d0   :  { %v341_v45 = vadd.f32 %v501_v43, %v340_v44 }
 0x1d2   :  { %v345_v46 = vadd.f32 %v341_v45, %v90_v12 }
 0x1d4   :  { %347 = vst [vmem:[#allocation10] sm:$0xff] %v345_v46 }
 0x1d7   :  { %v342_v47 = vpop.f32.mrf.mxu2 }
 0x1d8   :  { %v343_v48 = vadd.f32 %v501_v43, %v342_v47 }
 0x1da   :  { %v346_v49 = vadd.f32 %v343_v48, %v91_v13 }
 0x1dc   :  { %348 = vst [vmem:[#allocation10 + $0x8] sm:$0xff] %v346_v49 }
 0x1dd   :  { %361 = dma.vmem_to_hbm [thread:$0]  %s354_s27, 256, %s356_s29, [#allocation4], %s634_s13, %s634_s13, %s635_s14  }
 0x1de   :  { %628 = dma.done.wait [#allocation4], 256  }
 0x1df   :  { %629 = vsyncadd [#allocation4], 4294967040 }
 0x1e0   :  { %366 = vsyncpa [#allocation3], 1 }
 0x1e1   :  { %367 = vsyncpa [#allocation6], 1 }
 0x1e2   :  { %368 = vsyncpa [#allocation9], 1 }
 0x1e3   :  { %369 = vsyncpa [#allocation4], 1 }

</bundles_post_ra>
